<compile_context>
chip_gen: v7x
topology: tpu7x:2x2x1
jax: 0.10.0
libtpu: 0.0.40
codegen_flags: <defaults>
</compile_context>

<pallas_src>
import functools

import jax
import jax.numpy as jnp
from jax.experimental import pallas as pl
from jax.experimental.pallas import tpu as pltpu


def _conv_embed_kernel(x_ref, w_ref, b_ref, o_ref, *, kernel_size, padding,
                       compute_dtype):
    # x_ref: (B_tile, L, C_in)       unpadded input tile
    # w_ref: (K * C_in, C_out)       tap-major im2col weight matrix
    # b_ref: (1, C_out)              bias row
    # o_ref: (B_tile * L, C_out)     output rows (batch folded into M)
    b_tile, seq_len, c_in = x_ref.shape
    x = x_ref[...]

    # Circular k-shifted windows along the sequence axis, built in VMEM with static
    # shifts (slice + concat).  No circularly padded copy of x ever touches HBM.
    windows = []
    for k in range(kernel_size):
        shift = (padding - k) % seq_len
        windows.append(jnp.roll(x, shift, axis=1) if shift else x)

    # im2col slab: taps folded into the contraction axis, batch folded into M.
    slab = jnp.concatenate(windows, axis=-1)                     # (B_tile, L, K*C_in)
    slab = slab.reshape(b_tile * seq_len, kernel_size * c_in)    # (B_tile*L, K*C_in)

    w = w_ref[...]
    if compute_dtype is not None:
        slab = slab.astype(compute_dtype)
        w = w.astype(compute_dtype)

    # Single MXU matmul for the whole tile; f32 accumulation.
    acc = jnp.dot(slab, w, preferred_element_type=jnp.float32)
    # Bias folded into the final store (no separate accumulator buffer / extra pass).
    o_ref[...] = (acc + b_ref[...]).astype(o_ref.dtype)


def _pick_batch_tile(batch, seq_len, c_in, c_out, kernel_size,
                     vmem_budget_bytes=8 * 1024 * 1024):
    """Largest divisor of `batch` whose per-step working set fits a VMEM budget."""
    best = 1
    for t in range(1, batch + 1):
        if batch % t:
            continue
        # double-buffered input + output blocks, plus the im2col slab temporary (f32).
        per_step = 4 * t * seq_len * (2 * c_in + kernel_size * c_in + 2 * c_out)
        if per_step <= vmem_budget_bytes:
            best = t
    return best


def convolutional_embedding(x, weight, bias, *, padding=1, batch_tile=None,
                            compute_dtype=None):
    """x: (B, L, C_in); weight: (C_out, C_in, K) (torch Conv1d layout); bias: (C_out,)."""
    B, L, C_in = x.shape
    C_out, _, K = weight.shape

    if batch_tile is None:
        batch_tile = _pick_batch_tile(B, L, C_in, C_out, K)
    assert B % batch_tile == 0, "batch_tile must divide the batch size"

    # Tap-major im2col weights: (C_out, C_in, K) -> (K, C_in, C_out) -> (K*C_in, C_out).
    w2 = jnp.transpose(weight, (2, 1, 0)).reshape(K * C_in, C_out)
    b2 = bias.reshape(1, C_out)

    kernel = functools.partial(
        _conv_embed_kernel, kernel_size=K, padding=padding, compute_dtype=compute_dtype)

    out_flat = pl.pallas_call(
        kernel,
        out_shape=jax.ShapeDtypeStruct((B * L, C_out), x.dtype),
        grid_spec=pltpu.PrefetchScalarGridSpec(
            num_scalar_prefetch=0,
            grid=(B // batch_tile,),
            in_specs=[
                pl.BlockSpec((batch_tile, L, C_in), lambda i: (i, 0, 0)),
                pl.BlockSpec((K * C_in, C_out), lambda i: (0, 0)),
                pl.BlockSpec((1, C_out), lambda i: (0, 0)),
            ],
            out_specs=pl.BlockSpec((batch_tile * L, C_out), lambda i: (i, 0)),
        ),
        compiler_params=pltpu.CompilerParams(
            dimension_semantics=("parallel",),
            vmem_limit_bytes=32 * 1024 * 1024,
        ),
    )(x, w2, b2)

    # Metadata-only reshape back to (B, L, C_out) (row-major contiguity preserved).
    return out_flat.reshape(B, L, C_out)


def _reference(x, weight, bias, padding=1):
    B, L, C_in = x.shape
    C_out, _, K = weight.shape
    x_pad = jnp.concatenate([x[:, L - padding:, :], x, x[:, :padding, :]], axis=1)
    windows = jnp.stack([x_pad[:, k:k + L, :] for k in range(K)], axis=-1)  # (B,L,C_in,K)
    out = jnp.einsum("blik,oik->blo", windows, weight) + bias
    return out.astype(x.dtype)


if __name__ == "__main__":
    B, L = 2, 16
    input_features, output_features, kernel_size = 4, 8, 3

    key = jax.random.PRNGKey(0)
    kx, kw, kb = jax.random.split(key, 3)

    x = jax.random.normal(kx, (B, L, input_features), dtype=jnp.float32)
    # Deterministic synthetic Conv1d parameters (torch layout: (C_out, C_in, K)).
    weight = 0.1 * jax.random.normal(
        kw, (output_features, input_features, kernel_size), dtype=jnp.float32
    )
    bias = 0.1 * jax.random.normal(kb, (output_features,), dtype=jnp.float32)

    out = convolutional_embedding(x, weight, bias, padding=1)
    out = jax.block_until_ready(out)

    ref = _reference(x, weight, bias, padding=1)
    assert out.shape == (B, L, output_features)
    assert jnp.allclose(out, ref, atol=1e-5, rtol=1e-5), "Pallas kernel mismatch vs reference"

    print("KERNEL_OK")
</pallas_src>

<mosaic_0001>
module attributes {stable_mosaic.version = 11 : i64} {
  func.func @_conv_embed_kernel(%arg0: i32, %arg1: memref<2x16x4xf32, #tpu.memory_space<vmem>>, %arg2: memref<12x8xf32, #tpu.memory_space<vmem>>, %arg3: memref<1x8xf32, #tpu.memory_space<vmem>>, %arg4: memref<32x8xf32, #tpu.memory_space<vmem>>) attributes {dimension_semantics = [#tpu.dimension_semantics<parallel>], iteration_bounds = array<i64: 1>, scalar_prefetch = 0 : i64, scratch_operands = 0 : i64, tpu.core_type = #tpu.core_type<tc>, window_params = [{transform_indices = @transform_0, window_bounds = array<i64: 2, 16, 4>}, {pipeline_mode = #tpu.pipeline_mode<synchronous>, transform_indices = @transform_1, window_bounds = array<i64: 12, 8>}, {pipeline_mode = #tpu.pipeline_mode<synchronous>, transform_indices = @transform_2, window_bounds = array<i64: 1, 8>}, {transform_indices = @transform_3, window_bounds = array<i64: 32, 8>}]} {
    %c0 = arith.constant 0 : index
    %c0_0 = arith.constant 0 : index
    %c0_1 = arith.constant 0 : index
    %0 = vector.load %arg1[%c0, %c0_0, %c0_1] : memref<2x16x4xf32, #tpu.memory_space<vmem>>, vector<2x16x4xf32>
    %1 = vector.extract_strided_slice %0 {offsets = [0, 15, 0], sizes = [2, 1, 4], strides = [1, 1, 1]} : vector<2x16x4xf32> to vector<2x1x4xf32>
    %2 = vector.extract_strided_slice %0 {offsets = [0, 0, 0], sizes = [2, 15, 4], strides = [1, 1, 1]} : vector<2x16x4xf32> to vector<2x15x4xf32>
    %3 = tpu.concatenate %1, %2 in 1 : vector<2x1x4xf32>, vector<2x15x4xf32> -> vector<2x16x4xf32>
    %4 = vector.extract_strided_slice %0 {offsets = [0, 1, 0], sizes = [2, 15, 4], strides = [1, 1, 1]} : vector<2x16x4xf32> to vector<2x15x4xf32>
    %5 = vector.extract_strided_slice %0 {offsets = [0, 0, 0], sizes = [2, 1, 4], strides = [1, 1, 1]} : vector<2x16x4xf32> to vector<2x1x4xf32>
    %6 = tpu.concatenate %4, %5 in 1 : vector<2x15x4xf32>, vector<2x1x4xf32> -> vector<2x16x4xf32>
    %7 = tpu.concatenate %3, %0, %6 in 2 : vector<2x16x4xf32>, vector<2x16x4xf32>, vector<2x16x4xf32> -> vector<2x16x12xf32>
    %8 = vector.shape_cast %7 : vector<2x16x12xf32> to vector<32x12xf32>
    %c0_2 = arith.constant 0 : index
    %c0_3 = arith.constant 0 : index
    %9 = vector.load %arg2[%c0_2, %c0_3] : memref<12x8xf32, #tpu.memory_space<vmem>>, vector<12x8xf32>
    %cst = arith.constant dense<0.000000e+00> : vector<32x8xf32>
    %10 = tpu.matmul %8, %9, %cst {dimension_numbers = #tpu.dot_dimension_numbers<[1], [0], [0], [1], [0, 0, 1, 1], [], []>} : vector<32x12xf32>, vector<12x8xf32>, vector<32x8xf32> -> vector<32x8xf32>
    %c0_4 = arith.constant 0 : index
    %c0_5 = arith.constant 0 : index
    %11 = vector.load %arg3[%c0_4, %c0_5] : memref<1x8xf32, #tpu.memory_space<vmem>>, vector<1x8xf32>
    %12 = vector.broadcast %11 : vector<1x8xf32> to vector<32x8xf32>
    %13 = arith.addf %10, %12 : vector<32x8xf32>
    %c0_6 = arith.constant 0 : index
    %c0_7 = arith.constant 0 : index
    %14 = vector.load %arg4[%c0_6, %c0_7] : memref<32x8xf32, #tpu.memory_space<vmem>>, vector<32x8xf32>
    tpu.vector_store %arg4[%c0_6, %c0_7], %13 {strides = array<i32>} : memref<32x8xf32, #tpu.memory_space<vmem>>, vector<32x8xf32>,
    return
  }
  func.func @transform_0(%arg0: i32) -> (i32, i32, i32) {
    %c0_i32 = arith.constant 0 : i32
    %c0_i32_0 = arith.constant 0 : i32
    %c0_i32_1 = arith.constant 0 : i32
    return %arg0, %c0_i32, %c0_i32_0 : i32, i32, i32
  }
  func.func @transform_1(%arg0: i32) -> (i32, i32) {
    %c0_i32 = arith.constant 0 : i32
    %c0_i32_0 = arith.constant 0 : i32
    %c0_i32_1 = arith.constant 0 : i32
    return %c0_i32, %c0_i32_0 : i32, i32
  }
  func.func @transform_2(%arg0: i32) -> (i32, i32) {
    %c0_i32 = arith.constant 0 : i32
    %c0_i32_0 = arith.constant 0 : i32
    %c0_i32_1 = arith.constant 0 : i32
    return %c0_i32, %c0_i32_0 : i32, i32
  }
  func.func @transform_3(%arg0: i32) -> (i32, i32) {
    %c0_i32 = arith.constant 0 : i32
    %c0_i32_0 = arith.constant 0 : i32
    return %arg0, %c0_i32 : i32, i32
  }
}

</mosaic_0001>

<bundles_post_ra>
// kernel: tpu_custom_call.1
= control target key start
LH: loop header
LB: loop body
LE: loop exit
PB: predicated region body
PF: predicated region fallthrough
CT: control target
= control target key end

     0   :  { %vm26_vm0 = vcmask 1040384   ;;  %vm108_vm1 = vcmask 1043456   ;;  %s238_s18 = smov 4   ;;  %vm37_vm2 = vcmask 1046528   ;;  %vm239_vm3 = vmmov 1   ;;  %s315_s0 = inlined_call_operand.vmem [shape: f32[2,16,4], index: 0, kind: input, shape index: {}]   ;;  %s316_s1 = inlined_call_operand.vmem [shape: f32[12,8], index: 1, kind: input, shape index: {}]   ;;  %s317_s2 = inlined_call_operand.vmem [shape: f32[1,8], index: 2, kind: input, shape index: {}]   ;;  %s318_s3 = inlined_call_operand.vmem [shape: f32[32,8], index: 3, kind: output, shape index: {}]  }
   0x1   :  { %v15_v0 = vld [vmem:[%s315_s0 + $0x8] sm:$0xff]  ;;  %v14_v1 = vld [vmem:[%s315_s0] sm:$0xff]  ;;  %v17_v2 = vld [vmem:[%s315_s0 + $0x18] sm:$0xff]  ;;  %vm76_vm5 = vcmask 31744   ;;  %vm81_vm6 = vcmask 64512   ;;  %vm95_vm7 = vcmask 97280  }
   0x2   :  { %52 = vrot.lane.b32.xlu1 %v15_v0, %s238_s18  ;;  %v20_v3 = vrot.slane %v15_v0, 7  ;;  %v39_v4 = vrot.slane %v15_v0, 1  ;;  %50 = vrot.lane.b32.xlu0 %v14_v1, %s238_s18  ;;  %v27_v5 = vrot.slane %v14_v1, 7  ;;  %v38_v6 = vrot.slane %v14_v1, 1  ;;  %v16_v7 = vld [vmem:[%s315_s0 + $0x10] sm:$0xff]  ;;  %v86_v8 = vld [vmem:[%s316_s1] sm:$0xff]  ;;  %vm228_vm4 = vmpackc.low %vm108_vm1, %vm239_vm3 }
   0x3   :  { %v21_v9 = vrot.slane %v17_v2, 7  ;;  %v42_v10 = vrot.slane %v17_v2, 1  ;;  %v29_v11 = vrot.slane %v16_v7, 7  ;;  %v41_v12 = vrot.slane %v16_v7, 1  ;;  %v87_v13 = vld [vmem:[%s316_s1 + $0x8] sm:$0xf] }
   0x4   :  { %v28_v14 = vsel %vm26_vm0, %v27_v5, %v20_v3  ;;  %v35_v15 = vsel %vm26_vm0, %v20_v3, %v27_v5  ;;  %v227_v18 = vpack.c.bf16 %v87_v13, %v86_v8  ;;  %v40_v20 = vsel %vm37_vm2, %v38_v6, %v39_v4  ;;  %s240_s0 = smov 8   ;;  %v205_v39 = vld [vmem:[%s317_s2] ss:$0 sm:$0xff] }
   0x5   :  { %v30_v16 = vsel %vm26_vm0, %v29_v11, %v21_v9  ;;  %v36_v17 = vsel %vm26_vm0, %v21_v9, %v29_v11  ;;  %v43_v19 = vsel %vm37_vm2, %v41_v12, %v42_v10  ;;  %v49_v21 = vsel %vm37_vm2, %v42_v10, %v41_v12 }
   0x6   :  { %56 = vrot.lane.b32.xlu1 %v17_v2, %s238_s18  ;;  %54 = vrot.lane.b32.xlu0 %v16_v7, %s238_s18  ;;  %v48_v22 = vsel %vm37_vm2, %v39_v4, %v38_v6 }
   0x7   :  { %229 = vmatprep.subr.msk.bf16.mxu0 %vm228_vm4, %v227_v18  ;;  %233 = vmatprep.subr.msk.bf16.mxu1 %vm228_vm4, %v227_v18 }
   0x8   :  { %232 = vmatpush3.bf16.msk.msra.mxu0 %vm228_vm4, %v227_v18  ;;  %234 = vmatpush3.bf16.msk.msra.mxu1 %vm228_vm4, %v227_v18 }
   0xa   :  { %68 = vrot.lane.b32.xlu1 %v43_v19, %s240_s0  ;;  %64 = vrot.lane.b32.xlu0 %v40_v20, %s240_s0 }
   0xe   :  { %70 = vrot.lane.b32.xlu1 %v49_v21, %s240_s0  ;;  %66 = vrot.lane.b32.xlu0 %v48_v22, %s240_s0 }
  0x74   :  { %v53_v23 = vpop.permute.xlu1 %52  ;;  %v51_v24 = vpop.permute.xlu0 %50 }
  0x75   :  { %v77_v27 = vsel %vm76_vm5, %v35_v15, %v51_v24  ;;  %v78_v33 = vsel %vm76_vm5, %v28_v14, %v53_v23 }
  0x78   :  { %v57_v25 = vpop.permute.xlu1 %56  ;;  %v55_v26 = vpop.permute.xlu0 %54 }
  0x79   :  { %v79_v28 = vsel %vm76_vm5, %v36_v17, %v55_v26  ;;  %v80_v34 = vsel %vm76_vm5, %v30_v16, %v57_v25 }
  0x7c   :  { %v69_v29 = vpop.permute.xlu1 %68  ;;  %v65_v30 = vpop.permute.xlu0 %64 }
  0x7d   :  { %v82_v31 = vsel %vm81_vm6, %v77_v27, %v65_v30  ;;  %v84_v32 = vsel %vm81_vm6, %v79_v28, %v69_v29 }
  0x7e   :  { %221 = vmatprep.mubr.msk.f32.mxu0 %vm95_vm7, %v82_v31  ;;  %224 = vmatprep.mubr.msk.f32.mxu1 %vm95_vm7, %v84_v32 }
  0x80   :  { %v71_v35 = vpop.permute.xlu1 %70  ;;  %v67_v36 = vpop.permute.xlu0 %66 }
  0x81   :  { %v85_v37 = vsel %vm81_vm6, %v80_v34, %v71_v35  ;;  %v83_v38 = vsel %vm81_vm6, %v78_v33, %v67_v36 }
  0x82   :  { %222 = vmatmul.mubr.msk.f32.vlgmr.msra.gmra.mrb[0].mxu0 %vm95_vm7, %v83_v38  ;;  %225 = vmatmul.mubr.msk.f32.vlgmr.msra.gmra.mrb[0].mxu1 %vm95_vm7, %v85_v37 }
 0x155   :  { %v223_v40 = vpop.f32.mrb[0].mxu0  ;;  %v226_v41 = vpop.f32.mrb[0].mxu1 }
 0x156   :  { %v184_v42 = vadd.f32 %v223_v40, %v205_v39  ;;  %v194_v43 = vadd.f32 %v226_v41, %v205_v39  ;;  %v178_v44 = vpop.f32.mrb[1].mxu0  ;;  %v188_v45 = vpop.f32.mrb[1].mxu1 }
 0x157   :  { %v179_v46 = vadd.f32 %v205_v39, %v178_v44  ;;  %v189_v47 = vadd.f32 %v205_v39, %v188_v45 }
 0x158   :  { %198 = vst.msk [vmem:[%s318_s3 + $0x8] sm:$0xff] %vm81_vm6, %v184_v42  ;;  %200 = vst.msk [vmem:[%s318_s3 + $0x18] sm:$0xff] %vm81_vm6, %v194_v43 }
 0x159   :  { %197 = vst.msk [vmem:[%s318_s3] sm:$0xff] %vm81_vm6, %v179_v46  ;;  %199 = vst.msk [vmem:[%s318_s3 + $0x10] sm:$0xff] %vm81_vm6, %v189_v47 }

</bundles_post_ra>
